<compile_context>
chip_gen: v6e
topology: v6e:2x2x1
jax: 0.10.0
libtpu: 0.0.40
codegen_flags: <defaults>
</compile_context>

<pallas_src>
import math
import functools

import jax
import jax.numpy as jnp
from jax import lax
from jax.experimental import pallas as pl
from jax.experimental.pallas import tpu as pltpu


_VMEM_LIMIT = 48 * 1024 * 1024       # safe on v5e/v6e (128 MiB) and v7x (64 MiB per TC)
_WO_FUSE_BYTES = 16 * 1024 * 1024    # keep W_o resident only below ~25% of v7x VMEM


# ---------------------------------------------------------------------------
# Linear (projection) kernel
# ---------------------------------------------------------------------------

def _linear_kernel(x_ref, w_ref, b_ref, o_ref, acc_ref):
    """Tiled o = x @ w + b with an f32 accumulator over the K grid axis."""
    k = pl.program_id(2)

    @pl.when(k == 0)
    def _():
        acc_ref[...] = jnp.zeros_like(acc_ref)

    # Operands keep the input dtype (bf16 inputs hit the full-rate bf16 MXU
    # path automatically); accumulation is always f32.
    acc_ref[...] += jnp.dot(x_ref[...], w_ref[...],
                            preferred_element_type=jnp.float32)

    @pl.when(k == pl.num_programs(2) - 1)
    def _():
        o_ref[...] = (acc_ref[...] + b_ref[...].astype(jnp.float32)).astype(o_ref.dtype)


def _choose_tile(dim, pref):
    """Full dim if small / non-divisible (a full-extent block is always valid)."""
    if dim <= pref or dim % pref != 0:
        return dim
    return pref


def _pallas_linear(x2d, w, b, *, tm=512, tn=512, tk=512):
    """x2d: (M, K) @ w: (K, N) + b -> (M, N), tiled + pipelined."""
    M, K = x2d.shape
    _, N = w.shape
    tm = _choose_tile(M, tm)
    tn = _choose_tile(N, tn)
    tk = _choose_tile(K, tk)

    cost = pl.CostEstimate(
        flops=2 * M * N * K,
        transcendentals=0,
        bytes_accessed=(M * K + K * N + N + M * N) * x2d.dtype.itemsize,
    )
    return pl.pallas_call(
        _linear_kernel,
        grid=(M // tm, N // tn, K // tk),
        in_specs=[
            pl.BlockSpec((tm, tk), lambda i, j, k: (i, k)),
            pl.BlockSpec((tk, tn), lambda i, j, k: (k, j)),
            pl.BlockSpec((1, tn), lambda i, j, k: (0, j)),
        ],
        out_specs=pl.BlockSpec((tm, tn), lambda i, j, k: (i, j)),
        out_shape=jax.ShapeDtypeStruct((M, N), x2d.dtype),
        scratch_shapes=[pltpu.VMEM((tm, tn), jnp.float32)],
        compiler_params=pltpu.CompilerParams(
            dimension_semantics=("parallel", "parallel", "arbitrary"),
            vmem_limit_bytes=_VMEM_LIMIT),
        cost_estimate=cost,
    )(x2d, w, b.reshape(1, N))


# ---------------------------------------------------------------------------
# Flash-style attention kernel (online softmax over kv tiles)
# ---------------------------------------------------------------------------

def _attention_steps(q_ref, kv_ref, o_ref, m_scr, l_scr, acc_scr,
                     num_heads, d_k, wo_ref=None, bo_ref=None):
    """One (batch, q-tile, kv-tile) flash step over all heads.

    q_ref  : (1, tq,  D)   projected queries (1/sqrt(d_k) folded into W_q)
    kv_ref : (1, tkv, 2D)  projected keys | values (K in [:D], V in [D:])
    o_ref  : (1, tq,  D)   lane-dense output slab (written on the last kv step)
    m_scr  : (H, tq, 1) f32  running row-max per head
    l_scr  : (H, tq, 1) f32  running row-sum per head
    acc_scr: (tq, D)    f32  per-head PV accumulators packed along the lane axis
    """
    kv_step = pl.program_id(2)
    D = num_heads * d_k

    @pl.when(kv_step == 0)
    def _():
        m_scr[...] = jnp.full(m_scr.shape, -jnp.inf, dtype=jnp.float32)
        l_scr[...] = jnp.zeros(l_scr.shape, dtype=jnp.float32)
        acc_scr[...] = jnp.zeros(acc_scr.shape, dtype=jnp.float32)

    # Static unroll over heads; every head's state is stored straight back into
    # VMEM scratch (no head_outs vregs kept live, no cross-lane concatenate).
    for h in range(num_heads):
        lo = h * d_k
        qh = q_ref[0, :, lo:lo + d_k]                 # (tq, dk)
        kh = kv_ref[0, :, lo:lo + d_k]                # (tkv, dk)
        vh = kv_ref[0, :, D + lo:D + lo + d_k]        # (tkv, dk)

        # scores in f32, contract the last dims (no materialized K^T)
        s = lax.dot_general(qh, kh,
                            dimension_numbers=(((1,), (1,)), ((), ())),
                            preferred_element_type=jnp.float32)   # (tq, tkv)

        m_prev = m_scr[h]                                          # (tq, 1)
        m_new = jnp.maximum(m_prev, jnp.max(s, axis=-1, keepdims=True))
        alpha = jnp.exp(m_prev - m_new)                            # (tq, 1), EUP
        p = jnp.exp(s - m_new)                                     # (tq, tkv) f32

        l_scr[h] = alpha * l_scr[h] + jnp.sum(p, axis=-1, keepdims=True)
        m_scr[h] = m_new

        pv = jnp.dot(p.astype(vh.dtype), vh,
                     preferred_element_type=jnp.float32)           # (tq, dk)
        acc_scr[:, lo:lo + d_k] = alpha * acc_scr[:, lo:lo + d_k] + pv

    @pl.when(kv_step == pl.num_programs(2) - 1)
    def _():
        # normalize each head by its own softmax denominator (exact division:
        # this finalize runs once per (batch, q-tile) block)
        for h in range(num_heads):
            lo = h * d_k
            acc_scr[:, lo:lo + d_k] = acc_scr[:, lo:lo + d_k] / l_scr[h]
        attn = acc_scr[...]                                        # (tq, D) f32
        if wo_ref is not None:
            # fused output projection epilogue: (tq, D) @ W_o + b_o
            out = jnp.dot(attn.astype(wo_ref.dtype), wo_ref[...],
                          preferred_element_type=jnp.float32)
            out = out + bo_ref[...].astype(jnp.float32)
            o_ref[0] = out.astype(o_ref.dtype)
        else:
            o_ref[0] = attn.astype(o_ref.dtype)


def _attn_fused_kernel(q_ref, kv_ref, wo_ref, bo_ref, o_ref,
                       m_scr, l_scr, acc_scr, *, num_heads, d_k):
    _attention_steps(q_ref, kv_ref, o_ref, m_scr, l_scr, acc_scr,
                     num_heads, d_k, wo_ref=wo_ref, bo_ref=bo_ref)


def _attn_plain_kernel(q_ref, kv_ref, o_ref, m_scr, l_scr, acc_scr,
                       *, num_heads, d_k):
    _attention_steps(q_ref, kv_ref, o_ref, m_scr, l_scr, acc_scr,
                     num_heads, d_k)


# ---------------------------------------------------------------------------
# Wrappers
# ---------------------------------------------------------------------------

def _choose_seq_tile(seq, pref):
    """Largest tile <= pref that divides seq and keeps the sublane dim aligned."""
    if seq <= pref:
        return seq
    for t in range(pref, 7, -8):
        if seq % t == 0:
            return t
    return seq   # fall back to the full (untiled) length — always valid


def prepare_params(params, num_heads):
    """One-time parameter prep (hoisted out of the per-call path):
    fold 1/sqrt(d_k) into the Q projection and fuse the K|V weights."""
    D = params["W_q"].shape[0]
    d_k = D // num_heads
    scale = 1.0 / math.sqrt(d_k)
    return {
        "W_q": params["W_q"] * scale,
        "b_q": params["b_q"] * scale,
        "W_kv": jnp.concatenate([params["W_k"], params["W_v"]], axis=1),   # (D, 2D)
        "b_kv": jnp.concatenate([params["b_k"], params["b_v"]], axis=0),   # (2D,)
        "W_o": params["W_o"],
        "b_o": params["b_o"],
    }


def multi_head_cross_attention(q, kv, prepared, num_heads):
    """Forward pass of MultiHeadCrossAttention (inference: dropout is a no-op)."""
    B, Sq, D = q.shape
    _, Skv, _ = kv.shape
    assert D % num_heads == 0
    d_k = D // num_heads

    # ---- projections (Q; K|V fused into one matmul) ------------------------
    Qp = _pallas_linear(q.reshape(B * Sq, D), prepared["W_q"], prepared["b_q"])
    Qp = Qp.reshape(B, Sq, D)
    KVp = _pallas_linear(kv.reshape(B * Skv, D), prepared["W_kv"], prepared["b_kv"])
    KVp = KVp.reshape(B, Skv, 2 * D)

    # ---- flash-style attention over a (B, q-tile, kv-tile) grid ------------
    tq = _choose_seq_tile(Sq, 256)
    tkv = _choose_seq_tile(Skv, 512)
    fuse_wo = D * D * prepared["W_o"].dtype.itemsize <= _WO_FUSE_BYTES

    grid = (B, Sq // tq, Skv // tkv)
    q_spec = pl.BlockSpec((1, tq, D), lambda b, i, j: (b, i, 0))
    kv_spec = pl.BlockSpec((1, tkv, 2 * D), lambda b, i, j: (b, j, 0))
    out_spec = pl.BlockSpec((1, tq, D), lambda b, i, j: (b, i, 0))
    scratch = [
        pltpu.VMEM((num_heads, tq, 1), jnp.float32),   # running row-max per head
        pltpu.VMEM((num_heads, tq, 1), jnp.float32),   # running row-sum per head
        pltpu.VMEM((tq, D), jnp.float32),              # PV accumulator, lane-dense
    ]
    cparams = pltpu.CompilerParams(
        dimension_semantics=("parallel", "parallel", "arbitrary"),
        vmem_limit_bytes=_VMEM_LIMIT)
    cost = pl.CostEstimate(
        flops=4 * B * Sq * Skv * D + (2 * B * Sq * D * D if fuse_wo else 0),
        transcendentals=B * num_heads * Sq * Skv,
        bytes_accessed=(2 * B * Sq * D + 2 * B * Skv * D + D * D + D)
        * q.dtype.itemsize,
    )

    if fuse_wo:
        kernel = functools.partial(_attn_fused_kernel, num_heads=num_heads, d_k=d_k)
        return pl.pallas_call(
            kernel,
            grid=grid,
            in_specs=[q_spec, kv_spec,
                      pl.BlockSpec((D, D), lambda b, i, j: (0, 0)),   # W_o resident
                      pl.BlockSpec((1, D), lambda b, i, j: (0, 0))],  # b_o resident
            out_specs=out_spec,
            out_shape=jax.ShapeDtypeStruct((B, Sq, D), q.dtype),
            scratch_shapes=scratch,
            compiler_params=cparams,
            cost_estimate=cost,
        )(Qp, KVp, prepared["W_o"], prepared["b_o"].reshape(1, D))

    # Large D: keep W_o out of the attention kernel's VMEM (v7x: 64 MiB/TC)
    # and run a tiled output projection instead.
    kernel = functools.partial(_attn_plain_kernel, num_heads=num_heads, d_k=d_k)
    ctx = pl.pallas_call(
        kernel,
        grid=grid,
        in_specs=[q_spec, kv_spec],
        out_specs=out_spec,
        out_shape=jax.ShapeDtypeStruct((B, Sq, D), q.dtype),
        scratch_shapes=scratch,
        compiler_params=cparams,
        cost_estimate=cost,
    )(Qp, KVp)
    out = _pallas_linear(ctx.reshape(B * Sq, D), prepared["W_o"], prepared["b_o"])
    return out.reshape(B, Sq, D)


# ---------------------------------------------------------------------------
# Pure-JAX reference for verification
# ---------------------------------------------------------------------------

def _reference(q, kv, params, num_heads):
    B, Sq, D = q.shape
    dk = D // num_heads

    def lin(x, w, b):
        return x @ w + b

    Q = lin(q, params["W_q"], params["b_q"]).reshape(B, Sq, num_heads, dk).transpose(0, 2, 1, 3)
    K = lin(kv, params["W_k"], params["b_k"]).reshape(B, -1, num_heads, dk).transpose(0, 2, 1, 3)
    V = lin(kv, params["W_v"], params["b_v"]).reshape(B, -1, num_heads, dk).transpose(0, 2, 1, 3)
    s = jnp.einsum("bhqd,bhkd->bhqk", Q, K) / math.sqrt(dk)
    w = jax.nn.softmax(s.astype(jnp.float32), axis=-1).astype(s.dtype)
    o = jnp.einsum("bhqk,bhkd->bhqd", w, V)
    o = o.transpose(0, 2, 1, 3).reshape(B, Sq, D)
    return lin(o, params["W_o"], params["b_o"])


# ---------------------------------------------------------------------------
# Main
# ---------------------------------------------------------------------------

if __name__ == "__main__":
    B, Sq, Skv = 2, 8, 8
    d_model, num_heads = 32, 4

    key = jax.random.PRNGKey(0)
    keys = jax.random.split(key, 12)

    bound = 1.0 / math.sqrt(d_model)  # nn.Linear-style uniform init, deterministic
    params = {
        "W_q": jax.random.uniform(keys[0], (d_model, d_model), jnp.float32, -bound, bound),
        "b_q": jax.random.uniform(keys[1], (d_model,), jnp.float32, -bound, bound),
        "W_k": jax.random.uniform(keys[2], (d_model, d_model), jnp.float32, -bound, bound),
        "b_k": jax.random.uniform(keys[3], (d_model,), jnp.float32, -bound, bound),
        "W_v": jax.random.uniform(keys[4], (d_model, d_model), jnp.float32, -bound, bound),
        "b_v": jax.random.uniform(keys[5], (d_model,), jnp.float32, -bound, bound),
        "W_o": jax.random.uniform(keys[6], (d_model, d_model), jnp.float32, -bound, bound),
        "b_o": jax.random.uniform(keys[7], (d_model,), jnp.float32, -bound, bound),
    }

    q = jax.random.normal(keys[8], (B, Sq, d_model), jnp.float32)
    kv = jax.random.normal(keys[9], (B, Skv, d_model), jnp.float32)

    prepared = prepare_params(params, num_heads)   # one-time: scale fold + K|V fuse

    out = multi_head_cross_attention(q, kv, prepared, num_heads)
    out = jax.block_until_ready(out)

    ref = _reference(q, kv, params, num_heads)
    assert out.shape == (B, Sq, d_model)
    assert jnp.allclose(out, ref, atol=2e-3, rtol=2e-3), "mismatch vs reference"

    print("KERNEL_OK")
</pallas_src>

<mosaic_0001>
module attributes {stable_mosaic.version = 11 : i64} {
  func.func @_linear_kernel(%arg0: i32, %arg1: i32, %arg2: i32, %arg3: memref<16x32xf32, #tpu.memory_space<vmem>>, %arg4: memref<32x32xf32, #tpu.memory_space<vmem>>, %arg5: memref<1x32xf32, #tpu.memory_space<vmem>>, %arg6: memref<16x32xf32, #tpu.memory_space<vmem>>, %arg7: memref<16x32xf32, #tpu.memory_space<vmem>>) attributes {dimension_semantics = [#tpu.dimension_semantics<parallel>, #tpu.dimension_semantics<parallel>, #tpu.dimension_semantics<arbitrary>], iteration_bounds = array<i64: 1, 1, 1>, scalar_prefetch = 0 : i64, scratch_operands = 1 : i64, tpu.core_type = #tpu.core_type<tc>, window_params = [{transform_indices = @transform_0, window_bounds = array<i64: 16, 32>}, {transform_indices = @transform_1, window_bounds = array<i64: 32, 32>}, {transform_indices = @transform_2, window_bounds = array<i64: 1, 32>}, {transform_indices = @transform_3, window_bounds = array<i64: 16, 32>}]} {
    %c0_i32 = arith.constant 0 : i32
    %0 = arith.cmpi eq, %arg2, %c0_i32 : i32
    %1 = arith.extui %0 : i1 to i32
    %c0_i32_0 = arith.constant 0 : i32
    %2 = arith.cmpi ne, %1, %c0_i32_0 : i32
    scf.if %2 {
      %cst_10 = arith.constant 0.000000e+00 : f32
      %12 = vector.broadcast %cst_10 : f32 to vector<16x32xf32>
      %c0_11 = arith.constant 0 : index
      %c0_12 = arith.constant 0 : index
      %13 = vector.load %arg7[%c0_11, %c0_12] : memref<16x32xf32, #tpu.memory_space<vmem>>, vector<16x32xf32>
      tpu.vector_store %arg7[%c0_11, %c0_12], %12 {strides = array<i32>} : memref<16x32xf32, #tpu.memory_space<vmem>>, vector<16x32xf32>,
    } else {
    }
    %c0 = arith.constant 0 : index
    %c0_1 = arith.constant 0 : index
    %3 = vector.load %arg7[%c0, %c0_1] : memref<16x32xf32, #tpu.memory_space<vmem>>, vector<16x32xf32>
    %c0_2 = arith.constant 0 : index
    %c0_3 = arith.constant 0 : index
    %4 = vector.load %arg3[%c0_2, %c0_3] : memref<16x32xf32, #tpu.memory_space<vmem>>, vector<16x32xf32>
    %c0_4 = arith.constant 0 : index
    %c0_5 = arith.constant 0 : index
    %5 = vector.load %arg4[%c0_4, %c0_5] : memref<32x32xf32, #tpu.memory_space<vmem>>, vector<32x32xf32>
    %cst = arith.constant dense<0.000000e+00> : vector<16x32xf32>
    %6 = tpu.matmul %4, %5, %cst {dimension_numbers = #tpu.dot_dimension_numbers<[1], [0], [0], [1], [0, 0, 1, 1], [], []>} : vector<16x32xf32>, vector<32x32xf32>, vector<16x32xf32> -> vector<16x32xf32>
    %7 = arith.addf %3, %6 : vector<16x32xf32>
    %c0_6 = arith.constant 0 : index
    %c0_7 = arith.constant 0 : index
    %8 = vector.load %arg7[%c0_6, %c0_7] : memref<16x32xf32, #tpu.memory_space<vmem>>, vector<16x32xf32>
    tpu.vector_store %arg7[%c0_6, %c0_7], %7 {strides = array<i32>} : memref<16x32xf32, #tpu.memory_space<vmem>>, vector<16x32xf32>,
    %c0_i32_8 = arith.constant 0 : i32
    %9 = arith.cmpi eq, %arg2, %c0_i32_8 : i32
    %10 = arith.extui %9 : i1 to i32
    %c0_i32_9 = arith.constant 0 : i32
    %11 = arith.cmpi ne, %10, %c0_i32_9 : i32
    scf.if %11 {
      %c0_10 = arith.constant 0 : index
      %c0_11 = arith.constant 0 : index
      %12 = vector.load %arg7[%c0_10, %c0_11] : memref<16x32xf32, #tpu.memory_space<vmem>>, vector<16x32xf32>
      %c0_12 = arith.constant 0 : index
      %c0_13 = arith.constant 0 : index
      %13 = vector.load %arg5[%c0_12, %c0_13] : memref<1x32xf32, #tpu.memory_space<vmem>>, vector<1x32xf32>
      %14 = vector.broadcast %13 : vector<1x32xf32> to vector<16x32xf32>
      %15 = arith.addf %12, %14 : vector<16x32xf32>
      %c0_14 = arith.constant 0 : index
      %c0_15 = arith.constant 0 : index
      %16 = vector.load %arg6[%c0_14, %c0_15] : memref<16x32xf32, #tpu.memory_space<vmem>>, vector<16x32xf32>
      tpu.vector_store %arg6[%c0_14, %c0_15], %15 {strides = array<i32>} : memref<16x32xf32, #tpu.memory_space<vmem>>, vector<16x32xf32>,
    } else {
    }
    return
  }
  func.func @transform_0(%arg0: i32, %arg1: i32, %arg2: i32) -> (i32, i32) {
    %c0_i32 = arith.constant 0 : i32
    return %arg0, %arg2 : i32, i32
  }
  func.func @transform_1(%arg0: i32, %arg1: i32, %arg2: i32) -> (i32, i32) {
    %c0_i32 = arith.constant 0 : i32
    return %arg2, %arg1 : i32, i32
  }
  func.func @transform_2(%arg0: i32, %arg1: i32, %arg2: i32) -> (i32, i32) {
    %c0_i32 = arith.constant 0 : i32
    %c0_i32_0 = arith.constant 0 : i32
    return %c0_i32, %arg1 : i32, i32
  }
  func.func @transform_3(%arg0: i32, %arg1: i32, %arg2: i32) -> (i32, i32) {
    %c0_i32 = arith.constant 0 : i32
    return %arg0, %arg1 : i32, i32
  }
}

</mosaic_0001>

<bundles_post_ra>
// kernel: tpu_custom_call.1
= control target key start
LH: loop header
LB: loop body
LE: loop exit
PB: predicated region body
PF: predicated region fallthrough
CT: control target
= control target key end

     0   :  { %8 = vsyncpa [#allocation4], 0  ;;  %s325_s0 = inlined_call_operand.hbm [shape: f32[16,32], index: 0, kind: input, shape index: {}]   ;;  %s326_s1 = inlined_call_operand.hbm [shape: f32[32,32], index: 1, kind: input, shape index: {}]   ;;  %s327_s2 = inlined_call_operand.vmem [shape: f32[1,32], index: 2, kind: input, shape index: {}]   ;;  %s328_s3 = inlined_call_operand.hbm [shape: f32[16,32], index: 3, kind: output, shape index: {}]  }
   0x1   :  { %9 = vsyncpa [#allocation7], 0 }
   0x2   :  { %10 = vsyncpa [#allocation5], 0  ;;  %s270_s12 = smov [#allocation3]  }
   0x3   :  { %s16_s13 = sshll.u32 %s270_s12, 4  ;;  %s17_s13 = int_to_ptr.vmem [resolvable:$true] %s16_s13 }
   0x4   :  { %s212_s14 = scalar_lea.vmem %s17_s13, 256  ;;  %p217_p1 = scmp.lt.s32.totalorder %s17_s13, %s17_s13 }
   0x5   :  { %p213_p0 = scmp.ne.s32.totalorder %s17_s13, %s212_s14  ;;  %p218_p2 = scmp.lt.s32.totalorder %s212_s14, %s212_s14 }
   0x7   :  { %p219_p3 = por %p218_p2, %p217_p1 }
   0x9   :  { %p220_p4 = pnand %p219_p3, %p213_p0 }
   0xb   :  { %223 = shalt.err (!%p220_p4)
}
   0xc   :  { %s271_s15 = smov 128   ;;  %s272_s16 = smov 8  }
   0xd   :  { %22 = dma.hbm_to_vmem [thread:$0]  %s325_s0, 256, %s17_s13, [#allocation4], %s271_s15, %s271_s15, %s272_s16  }
   0xe   :  { %s273_s19 = smov [#allocation6]  }
   0xf   :  { %s28_s20 = sshll.u32 %s273_s19, 4  ;;  %s29_s20 = int_to_ptr.vmem [resolvable:$true] %s28_s20 }
  0x10   :  { %s232_s21 = scalar_lea.vmem %s29_s20, 512  ;;  %p237_p6 = scmp.lt.s32.totalorder %s29_s20, %s29_s20 }
  0x11   :  { %p233_p5 = scmp.ne.s32.totalorder %s29_s20, %s232_s21  ;;  %p238_p7 = scmp.lt.s32.totalorder %s232_s21, %s232_s21 }
  0x13   :  { %p239_p8 = por %p238_p7, %p237_p6 }
  0x15   :  { %p240_p9 = pnand %p239_p8, %p233_p5 }
  0x17   :  { %243 = shalt.err (!%p240_p9)
}
  0x18   :  { %34 = dma.hbm_to_vmem [thread:$0]  %s326_s1, 512, %s29_s20, [#allocation7], %s271_s15, %s271_s15, %s272_s16  }
  0x19   :  { %264 = dma.done.wait [#allocation4], 256  }
  0x1a   :  { %265 = vsyncadd [#allocation4], 4294967040 }
  0x1b   :  { %266 = dma.done.wait [#allocation7], 512  }
  0x1c   :  { %267 = vsyncadd [#allocation7], 4294966784  ;;  %vm47_vm0 = vcmask 261120   ;;  %v274_v0 = vmov 0.0   ;;  %v57_v1 = vld [vmem:[#allocation6 + $0x18] sm:$0xff]  ;;  %v56_v2 = vld [vmem:[#allocation6 + $0x10] sm:$0xff] }
  0x1d   :  { %49 = vst.msk [vmem:[#allocation2 + $0x8] sm:$0xff] %vm47_vm0, %v274_v0  ;;  %48 = vst.msk [vmem:[#allocation2] sm:$0xff] %vm47_vm0, %v274_v0  ;;  %187 = vmatprep.subr.mxu0 %v57_v1  ;;  %v52_v3 = vld [vmem:[#allocation3] sm:$0xff]  ;;  %v55_v4 = vld [vmem:[#allocation6 + $0x8] sm:$0xff]  ;;  %s275_s24 = smov [#allocation8]  }
  0x1e   :  { %188 = vmatpush3.msra.mxu0 %v57_v1  ;;  %195 = vmatprep.mubr.msk.f32.mxu0 %vm47_vm0, %v52_v3  ;;  %v54_v5 = vld [vmem:[#allocation6] sm:$0xff]  ;;  %v53_v6 = vld [vmem:[#allocation3 + $0x8] sm:$0xff]  ;;  %s165_s25 = sshll.u32 %s275_s24, 4  ;;  %s166_s25 = int_to_ptr.vmem [resolvable:$true] %s165_s25 }
  0x1f   :  { %189 = vmatprep.subr.mxu0 %v56_v2  ;;  %v180_v13 = vld [vmem:[%s327_s2] ss:$0 sm:$0xff]  ;;  %s244_s26 = scalar_lea.vmem %s166_s25, 256  ;;  %p249_p11 = scmp.lt.s32.totalorder %s166_s25, %s166_s25 }
  0x20   :  { %190 = vmatpush3.msra.mxu0 %v56_v2  ;;  %p245_p10 = scmp.ne.s32.totalorder %s166_s25, %s244_s26  ;;  %p250_p12 = scmp.lt.s32.totalorder %s244_s26, %s244_s26 }
  0x21   :  { %191 = vmatprep.subr.mxu0 %v55_v4 }
  0x22   :  { %192 = vmatpush3.msra.mxu0 %v55_v4  ;;  %p251_p13 = por %p250_p12, %p249_p11 }
  0x23   :  { %193 = vmatprep.subr.mxu0 %v54_v5 }
  0x24   :  { %194 = vmatpush3.msra.mxu0 %v54_v5  ;;  %v51_v7 = vld [vmem:[#allocation2 + $0x8] sm:$0xff]  ;;  %v50_v9 = vld [vmem:[#allocation2] sm:$0xff]  ;;  %p252_p0 = pnand %p251_p13, %p245_p10 }
  0x25   :  { %196 = vmatmul.mubr.msk.f32.vlgmr.msra.gmra.mxu0 %vm47_vm0, %v53_v6 }
  0xe5   :  { %v197_v8 = vpop.f32.mrf.mxu0 }
  0xe6   :  { %v141_v10 = vadd.f32 %v197_v8, %v51_v7 }
  0xe7   :  { %v131_v11 = vpop.f32.mrf.mxu0 }
  0xe8   :  { %143 = vst.msk [vmem:[#allocation2 + $0x8] sm:$0xff] %vm47_vm0, %v141_v10  ;;  %v140_v12 = vadd.f32 %v131_v11, %v50_v9 }
  0xea   :  { %142 = vst.msk [vmem:[#allocation2] sm:$0xff] %vm47_vm0, %v140_v12 }
  0xef   :  { %v148_v14 = vld [vmem:[#allocation2 + $0x8] sm:$0xff] }
  0xf0   :  { %v157_v15 = vadd.f32 %v180_v13, %v148_v14 }
  0xf1   :  { %v147_v16 = vld [vmem:[#allocation2] sm:$0xff] }
  0xf2   :  { %v156_v17 = vadd.f32 %v180_v13, %v147_v16  ;;  %159 = vst.msk [vmem:[#allocation8 + $0x8] sm:$0xff] %vm47_vm0, %v157_v15 }
  0xf4   :  { %158 = vst.msk [vmem:[#allocation8] sm:$0xff] %vm47_vm0, %v156_v17 }
  0xf5   :  { %255 = shalt.err (!%p252_p0)
}
  0xf6   :  { %171 = dma.vmem_to_hbm [thread:$0]  %s166_s25, 256, %s328_s3, [#allocation5], %s271_s15, %s271_s15, %s272_s16  }
  0xf7   :  { %268 = dma.done.wait [#allocation5], 256  }
  0xf8   :  { %269 = vsyncadd [#allocation5], 4294967040 }
  0xf9   :  { %175 = vsyncpa [#allocation4], 1 }
  0xfa   :  { %176 = vsyncpa [#allocation7], 1 }
  0xfb   :  { %177 = vsyncpa [#allocation5], 1 }

</bundles_post_ra>
